<compile_context>
chip_gen: v7x
topology: tpu7x:2x2x1
jax: 0.10.0
libtpu: 0.0.40
codegen_flags: <defaults>
</compile_context>

<pallas_src>
import functools
import math

import jax
import jax.numpy as jnp
from jax.experimental import pallas as pl
from jax.experimental.pallas import tpu as pltpu


# ----------------------------------------------------------------------------
# Kernel 1: generic fused linear (+ optional ReLU), tiled over M
# ----------------------------------------------------------------------------
def _linear_kernel(x_ref, w_ref, b_ref, o_ref, *, relu):
    y = jnp.dot(x_ref[...], w_ref[...], preferred_element_type=jnp.float32) + b_ref[...]
    if relu:
        y = jnp.maximum(y, 0.0)
    o_ref[...] = y.astype(o_ref.dtype)


def linear(x, w, b=None, relu=False, block_m=512):
    M, K = x.shape
    K2, N = w.shape
    assert K == K2
    if b is None:
        b = jnp.zeros((N,), jnp.float32)
    TM = M if M <= block_m else block_m
    return pl.pallas_call(
        functools.partial(_linear_kernel, relu=relu),
        out_shape=jax.ShapeDtypeStruct((M, N), jnp.float32),
        grid=(pl.cdiv(M, TM),),
        in_specs=[
            pl.BlockSpec((TM, K), lambda i: (i, 0)),
            pl.BlockSpec((K, N), lambda i: (0, 0)),
            pl.BlockSpec((1, N), lambda i: (0, 0)),
        ],
        out_specs=pl.BlockSpec((TM, N), lambda i: (i, 0)),
        compiler_params=pltpu.CompilerParams(dimension_semantics=("parallel",)),
    )(x, w, b.reshape(1, N))


# ----------------------------------------------------------------------------
# Kernel 2: stacked linear (per-layer weights), tiled over M
# ----------------------------------------------------------------------------
def _stacked_linear_kernel(x_ref, w_ref, b_ref, o_ref, *, relu):
    y = jnp.dot(x_ref[0], w_ref[0], preferred_element_type=jnp.float32) + b_ref[0]
    if relu:
        y = jnp.maximum(y, 0.0)
    o_ref[0] = y.astype(o_ref.dtype)


def stacked_linear(x, w, b, relu=False, block_m=512):
    """x: (L, M, K), w: (L, K, N), b: (L, N) -> (L, M, N)."""
    L, M, K = x.shape
    N = w.shape[2]
    TM = M if M <= block_m else block_m
    return pl.pallas_call(
        functools.partial(_stacked_linear_kernel, relu=relu),
        out_shape=jax.ShapeDtypeStruct((L, M, N), jnp.float32),
        grid=(L, pl.cdiv(M, TM)),
        in_specs=[
            pl.BlockSpec((1, TM, K), lambda l, m: (l, m, 0)),
            pl.BlockSpec((1, K, N), lambda l, m: (l, 0, 0)),
            pl.BlockSpec((1, 1, N), lambda l, m: (l, 0, 0)),
        ],
        out_specs=pl.BlockSpec((1, TM, N), lambda l, m: (l, m, 0)),
        compiler_params=pltpu.CompilerParams(dimension_semantics=("parallel", "parallel")),
    )(x, w, b.reshape(L, 1, N))


# ----------------------------------------------------------------------------
# Kernel 3: fused entity encoder + QKV projection for the 3 attention layers
#   out[l] = relu(x @ Wenc_l + benc_l) @ Wqkv_l      (x shared across layers)
# ----------------------------------------------------------------------------
def _enc_qkv_kernel(x_ref, wenc_ref, benc_ref, wqkv_ref, o_ref):
    h = jnp.dot(x_ref[...], wenc_ref[0], preferred_element_type=jnp.float32) + benc_ref[0]
    h = jnp.maximum(h, 0.0)
    o_ref[0] = jnp.dot(h, wqkv_ref[0], preferred_element_type=jnp.float32)


def encoder_qkv(x, wenc_stack, benc_stack, wqkv_stack, block_m=512):
    """x: (M, ed); wenc: (L, ed, d); benc: (L, d); wqkv: (L, d, 3d) -> (L, M, 3d)."""
    M, ed = x.shape
    L, _, d = wenc_stack.shape
    d3 = wqkv_stack.shape[2]
    TM = M if M <= block_m else block_m
    return pl.pallas_call(
        _enc_qkv_kernel,
        out_shape=jax.ShapeDtypeStruct((L, M, d3), jnp.float32),
        grid=(L, pl.cdiv(M, TM)),
        in_specs=[
            pl.BlockSpec((TM, ed), lambda l, m: (m, 0)),
            pl.BlockSpec((1, ed, d), lambda l, m: (l, 0, 0)),
            pl.BlockSpec((1, 1, d), lambda l, m: (l, 0, 0)),
            pl.BlockSpec((1, d, d3), lambda l, m: (l, 0, 0)),
        ],
        out_specs=pl.BlockSpec((1, TM, d3), lambda l, m: (l, m, 0)),
        compiler_params=pltpu.CompilerParams(dimension_semantics=("parallel", "parallel")),
    )(x, wenc_stack, benc_stack.reshape(L, 1, d), wqkv_stack)


# ----------------------------------------------------------------------------
# Kernel 4: batched masked multi-head attention core (QKV precomputed, shared
#           across replicas).  Produces concatenated head outputs (before the
#           output projection, which is done as a big stacked matmul outside).
# ----------------------------------------------------------------------------
def _attn_kernel(qkv_ref, pre_ref, o_ref, *, n_heads, nq, d, scale):
    qkv = qkv_ref[0]                                  # (BB, ne, 3d)
    q = qkv[:, :nq, 0:d]                              # (BB, nq, d)
    k = qkv[:, :, d:2 * d]                            # (BB, ne, d)
    v = qkv[:, :, 2 * d:3 * d]                        # (BB, ne, d)
    pre = pre_ref[0] > 0.5                            # (BB, nq, ne) True == masked
    hd = d // n_heads
    for h in range(n_heads):
        qh = q[:, :, h * hd:(h + 1) * hd]
        kh = k[:, :, h * hd:(h + 1) * hd]
        vh = v[:, :, h * hd:(h + 1) * hd]
        logits = jnp.einsum('bqc,bkc->bqk', qh, kh,
                            preferred_element_type=jnp.float32) * scale
        neg = jnp.where(pre, -1e30, logits)
        m = jnp.max(neg, axis=-1, keepdims=True)
        e = jnp.where(pre, 0.0, jnp.exp(neg - m))
        s = jnp.sum(e, axis=-1, keepdims=True)
        # all-masked rows -> weights 0 (matches PyTorch NaN -> 0 fill)
        w = e * pl.reciprocal(jnp.where(s == 0.0, 1.0, s), approx=True)
        head_out = jnp.einsum('bqk,bkc->bqc', w, vh,
                              preferred_element_type=jnp.float32)          # (BB, nq, hd)
        o_ref[0, :, :, h * hd:(h + 1) * hd] = head_out


def multihead_attention(qkv, pre_mask, n_heads, block_b=64):
    """qkv: (L, B, ne, 3d)  (shared across R replicas)
       pre_mask: (R, B, nq, ne)
       returns concatenated head outputs: (L, R, B, nq, d)."""
    L, B, ne, d3 = qkv.shape
    d = d3 // 3
    R, _, nq, _ = pre_mask.shape
    BB = B if B <= block_b else block_b
    Bp = ((B + BB - 1) // BB) * BB
    if Bp != B:
        qkv = jnp.pad(qkv, ((0, 0), (0, Bp - B), (0, 0), (0, 0)))
        pre_mask = jnp.pad(pre_mask, ((0, 0), (0, Bp - B), (0, 0), (0, 0)),
                           constant_values=1.0)
    nB = Bp // BB
    scale = 1.0 / math.sqrt(d // n_heads)
    kernel = functools.partial(_attn_kernel, n_heads=n_heads, nq=nq, d=d, scale=scale)
    out = pl.pallas_call(
        kernel,
        out_shape=jax.ShapeDtypeStruct((L * R, Bp, nq, d), jnp.float32),
        grid=(L, nB, R),  # R innermost -> shared qkv block stays resident across replicas
        in_specs=[
            pl.BlockSpec((1, BB, ne, d3), lambda l, b, r: (l, b, 0, 0)),
            pl.BlockSpec((1, BB, nq, ne), lambda l, b, r: (r, b, 0, 0)),
        ],
        out_specs=pl.BlockSpec((1, BB, nq, d), lambda l, b, r: (l * R + r, b, 0, 0)),
        compiler_params=pltpu.CompilerParams(
            dimension_semantics=("parallel", "parallel", "arbitrary")),
    )(qkv, pre_mask)
    return out.reshape(L, R, Bp, nq, d)[:, :, :B]


# ----------------------------------------------------------------------------
# Kernel 5: GRUCell rolled over time (input-to-hidden gates precomputed outside)
# ----------------------------------------------------------------------------
def _gru_kernel(gi_ref, h0_ref, whh_ref, bhh_ref, hs_ref, h_scr):
    t = pl.program_id(0)

    @pl.when(t == 0)
    def _():
        h_scr[...] = h0_ref[...]

    gi = gi_ref[0]                                    # (B', 3H)  = x @ Wih + bih
    h = h_scr[...]                                    # (B', H)
    H = h.shape[-1]
    gh = jnp.dot(h, whh_ref[...], preferred_element_type=jnp.float32) + bhh_ref[...]
    r = jax.nn.sigmoid(gi[:, 0:H] + gh[:, 0:H])
    z = jax.nn.sigmoid(gi[:, H:2 * H] + gh[:, H:2 * H])
    n = jnp.tanh(gi[:, 2 * H:3 * H] + r * gh[:, 2 * H:3 * H])
    h_new = (1.0 - z) * n + z * h
    h_scr[...] = h_new
    hs_ref[0] = h_new


def gru_sequence(gi_tbh, h0, whh_t, bhh):
    """gi_tbh: (T, B', 3H) precomputed x@Wih+bih, h0: (B', H), whh_t: (H, 3H)."""
    T, Bp, H3 = gi_tbh.shape
    H = H3 // 3
    return pl.pallas_call(
        _gru_kernel,
        out_shape=jax.ShapeDtypeStruct((T, Bp, H), jnp.float32),
        grid=(T,),
        in_specs=[
            pl.BlockSpec((1, Bp, H3), lambda t: (t, 0, 0)),
            pl.BlockSpec((Bp, H), lambda t: (0, 0)),
            pl.BlockSpec((H, H3), lambda t: (0, 0)),
            pl.BlockSpec((1, H3), lambda t: (0, 0)),
        ],
        out_specs=pl.BlockSpec((1, Bp, H), lambda t: (t, 0, 0)),
        scratch_shapes=[pltpu.VMEM((Bp, H), jnp.float32)],
        compiler_params=pltpu.CompilerParams(dimension_semantics=("arbitrary",)),
    )(gi_tbh, h0, whh_t, bhh.reshape(1, H3))


# ----------------------------------------------------------------------------
# Core forward: de-duplicated across R replicas (only obs masks differ per replica)
# ----------------------------------------------------------------------------
def _forward_core(params, entities, pre_mask_rb, entity_mask, hidden_state, cfg, bs, ts):
    """entities: (B, ne, ed); pre_mask_rb: (R, B, na, ne); entity_mask: (B, ne);
       hidden_state: (bs, na, H).  Returns q, hs, x2_gate (replica-major batch)."""
    R = pre_mask_rb.shape[0]
    B, ne, ed = entities.shape
    na = cfg["n_agents"]
    d = cfg["attn_embed_dim"]
    H = cfg["rnn_hidden_dim"]
    nh = cfg["attn_n_heads"]
    agent_mask = entity_mask[:, :na]                                       # (B, na)

    # --- fused entity encoders + QKV projections (computed once, shared across replicas)
    wenc = jnp.stack([params["fc1_w"], params["fc_msg1_w"], params["gate_fc1_w"]])
    benc = jnp.stack([params["fc1_b"], params["fc_msg1_b"], params["gate_fc1_b"]])
    wqkv = jnp.stack([params["attn_wqkv"], params["lmsg_wqkv"], params["gatea_wqkv"]])
    qkv_all = encoder_qkv(entities.reshape(B * ne, ed), wenc, benc, wqkv)  # (3, B*ne, 3d)
    qkv_all = qkv_all.reshape(3, B, ne, 3 * d)

    # --- masked multi-head attention: 3 layers x R replicas in one pallas_call
    heads = multihead_attention(qkv_all, pre_mask_rb, nh)                  # (3, R, B, na, d)

    # --- output projections as one stacked big-M matmul, then post mask
    wout = jnp.stack([params["attn_wout"], params["lmsg_wout"], params["gatea_wout"]])
    bout = jnp.stack([params["attn_bout"], params["lmsg_bout"], params["gatea_bout"]])
    proj = stacked_linear(heads.reshape(3, R * B * na, d), wout, bout)     # (3, R*B*na, d)
    proj = proj.reshape(3, R, B, na, d)
    post = (agent_mask > 0.5)[None, None, :, :, None]
    proj = jnp.where(post, 0.0, proj)
    x2, x2_msg, x2_gate_attn = proj[0], proj[1], proj[2]                   # (R, B, na, d)

    # --- message gate (argmax(softmax(x)) == argmax(x))
    x2_gate = linear(x2_gate_attn.reshape(R * B * na, d),
                     params["gate_fc2_w"], params["gate_fc2_b"]).reshape(R * B, na, 2)
    # TODO(synk): train_id / force_msg gate override not implemented (defaults to None).
    gate = jnp.argmax(x2_gate, axis=-1).astype(jnp.float32)                # (R*B, na)
    gated_msg = x2_msg.reshape(R * B, na, d) * gate[..., None]

    # --- global message attention (inputs differ per replica -> batch = R*B)
    full_obs_mask = 1.0 - (1.0 - agent_mask[:, None, :]) * (1.0 - agent_mask[:, :, None])
    qkv_g = linear(gated_msg.reshape(R * B * na, d), params["gmsg_wqkv"])  # no bias
    qkv_g = qkv_g.reshape(1, R * B, na, 3 * d)
    pre_g = jnp.tile(full_obs_mask, (R, 1, 1)).reshape(1, R * B, na, na)
    heads_g = multihead_attention(qkv_g, pre_g, nh)                        # (1, 1, R*B, na, d)
    gproj = linear(heads_g.reshape(R * B * na, d),
                   params["gmsg_wout"], params["gmsg_bout"]).reshape(R, B, na, d)
    global_msg = jnp.where(post[0], 0.0, gproj)                            # (R, B, na, d)

    # --- fc2 + GRU (input-to-hidden matmul hoisted out of the serial time loop)
    x3_in = jnp.concatenate([x2, global_msg], axis=-1).reshape(R * B * na, 2 * d)
    x3 = linear(x3_in, params["fc2_w"], params["fc2_b"], relu=True)        # (R*B*na, H)
    # reorder (r, bs, ts, na) -> time-major (ts, r*bs*na)
    x3_tm = jnp.transpose(x3.reshape(R, bs, ts, na, H),
                          (2, 0, 1, 3, 4)).reshape(ts, R * bs * na, H)
    gi = linear(x3_tm.reshape(ts * R * bs * na, H),
                params["gru_wih"], params["gru_bih"]).reshape(ts, R * bs * na, 3 * H)
    h0 = jnp.tile(hidden_state.reshape(1, bs * na, H), (R, 1, 1)).reshape(R * bs * na, H)
    hs_tm = gru_sequence(gi, h0, params["gru_whh"], params["gru_bhh"])     # (ts, R*bs*na, H)

    # --- action values (computed in time-major layout; transpose once at the end)
    q_tm = linear(hs_tm.reshape(ts * R * bs * na, H), params["fc3_w"], params["fc3_b"])
    n_act = q_tm.shape[-1]
    q_tm = q_tm.reshape(ts, R, bs, na, n_act)
    am_tm = jnp.transpose(agent_mask.reshape(bs, ts, na), (1, 0, 2))       # (ts, bs, na)
    q_tm = jnp.where(am_tm[:, None, :, :, None] > 0.5, 0.0, q_tm)
    q = jnp.transpose(q_tm, (1, 2, 0, 3, 4)).reshape(R * bs, ts, na, n_act)
    hs = jnp.transpose(hs_tm.reshape(ts, R, bs, na, H),
                       (1, 2, 0, 3, 4)).reshape(R * bs, ts, na, H)
    return q, hs, x2_gate


# ----------------------------------------------------------------------------
# Imagine forward (ImagineEntityAttentionRNNMsgAgent.forward)
# ----------------------------------------------------------------------------
def imagine_forward(params, entities, obs_mask, entity_mask, hidden_state, cfg, key,
                    imagine=True):
    bs, ts, ne, ed = entities.shape
    na = cfg["n_agents"]
    B = bs * ts
    ent_b = entities.reshape(B, ne, ed).astype(jnp.float32)
    emask_b = entity_mask.reshape(B, ne).astype(jnp.float32)
    obs_f = obs_mask.astype(jnp.float32)
    hidden_f = hidden_state.astype(jnp.float32)

    if not imagine:
        pre_rb = obs_f.reshape(B, ne, ne)[:, :na, :][None]                 # (1, B, na, ne)
        return _forward_core(params, ent_b, pre_rb, emask_b, hidden_f, cfg, bs, ts)

    k1, k2 = jax.random.split(key)
    probs = jax.random.uniform(k1, (bs, 1, 1))
    groupA = (jax.random.uniform(k2, (bs, 1, ne)) < probs).astype(jnp.float32)
    groupB = 1.0 - groupA

    lor = lambda a, b: jnp.minimum(a + b, 1.0)            # logical_or on {0,1}
    em0 = entity_mask[:, 0:1].astype(jnp.float32)          # (bs, 1, ne)
    groupA = lor(groupA, em0)
    groupB = lor(groupB, em0)

    def e2a(m):  # entitymask2attnmask: (bs, 1, ne) -> (bs, 1, ne, ne)
        return 1.0 - (1.0 - m)[..., :, None] * (1.0 - m)[..., None, :]

    Aattn = e2a(groupA)
    Battn = e2a(groupB)
    interact = lor(1.0 - Aattn, 1.0 - Battn)
    within = 1.0 - interact
    active = e2a(em0)
    W_noobs = lor(within, active)
    I_noobs = lor(interact, active)
    within_obs = lor(within, obs_f)                        # (bs, ts, ne, ne)
    interact_obs = lor(interact, obs_f)

    # Only the observation masks differ between the 3 imagine replicas; everything
    # replica-independent is computed once inside _forward_core.
    pre_rb = jnp.stack([
        obs_f.reshape(B, ne, ne)[:, :na, :],
        within_obs.reshape(B, ne, ne)[:, :na, :],
        interact_obs.reshape(B, ne, ne)[:, :na, :],
    ], axis=0)                                             # (3, B, na, ne)

    q, hs, x2_gate = _forward_core(params, ent_b, pre_rb, emask_b, hidden_f, cfg, bs, ts)
    W_rep = jnp.tile(W_noobs, (1, ts, 1, 1))
    I_rep = jnp.tile(I_noobs, (1, ts, 1, 1))
    return q, hs, x2_gate, (W_rep, I_rep)


# ----------------------------------------------------------------------------
# Deterministic synthetic parameter initialization
# ----------------------------------------------------------------------------
def init_params(key, input_shape, cfg):
    d = cfg["attn_embed_dim"]
    H = cfg["rnn_hidden_dim"]
    n_act = cfg["n_actions"]
    ks = list(jax.random.split(key, 40))
    it = iter(ks)

    def lin(k, fan_in, fan_out):
        kw, kb = jax.random.split(k)
        s = 1.0 / math.sqrt(fan_in)
        w = jax.random.uniform(kw, (fan_in, fan_out), jnp.float32, -s, s)
        b = jax.random.uniform(kb, (fan_out,), jnp.float32, -s, s)
        return w, b

    p = {}
    p["fc1_w"], p["fc1_b"] = lin(next(it), input_shape, d)
    p["fc_msg1_w"], p["fc_msg1_b"] = lin(next(it), input_shape, d)
    p["gate_fc1_w"], p["gate_fc1_b"] = lin(next(it), input_shape, d)
    p["gate_fc2_w"], p["gate_fc2_b"] = lin(next(it), d, 2)
    p["fc2_w"], p["fc2_b"] = lin(next(it), 2 * d, H)
    p["fc3_w"], p["fc3_b"] = lin(next(it), H, n_act)

    for name in ["attn", "lmsg", "gmsg", "gatea"]:
        s = 1.0 / math.sqrt(d)
        p[f"{name}_wqkv"] = jax.random.uniform(next(it), (d, 3 * d), jnp.float32, -s, s)
        p[f"{name}_wout"], p[f"{name}_bout"] = lin(next(it), d, d)

    sg = 1.0 / math.sqrt(H)
    p["gru_wih"] = jax.random.uniform(next(it), (H, 3 * H), jnp.float32, -sg, sg)
    p["gru_whh"] = jax.random.uniform(next(it), (H, 3 * H), jnp.float32, -sg, sg)
    p["gru_bih"] = jax.random.uniform(next(it), (3 * H,), jnp.float32, -sg, sg)
    p["gru_bhh"] = jax.random.uniform(next(it), (3 * H,), jnp.float32, -sg, sg)
    return p


# ----------------------------------------------------------------------------
if __name__ == "__main__":
    cfg = dict(n_agents=3, n_actions=6, attn_embed_dim=32, attn_n_heads=4,
               rnn_hidden_dim=32)
    bs, ts, ne, ed = 2, 3, 5, 11   # small synthetic shapes

    root = jax.random.PRNGKey(0)
    kp, ke, ko, km, kg = jax.random.split(root, 5)

    params = init_params(kp, ed, cfg)

    entities = jax.random.normal(ke, (bs, ts, ne, ed), jnp.float32)
    obs_mask = (jax.random.uniform(ko, (bs, ts, ne, ne)) < 0.3).astype(jnp.float32)
    entity_mask = (jax.random.uniform(km, (bs, ts, ne)) < 0.2).astype(jnp.float32)
    hidden_state = jnp.zeros((bs, cfg["n_agents"], cfg["rnn_hidden_dim"]), jnp.float32)

    # imagine=True path (3 mask replicas, projections de-duplicated)
    out = imagine_forward(params, entities, obs_mask, entity_mask, hidden_state,
                          cfg, kg, imagine=True)
    out = jax.block_until_ready(out)
    q, hs, x2_gate, (W_rep, I_rep) = out
    assert q.shape == (3 * bs, ts, cfg["n_agents"], cfg["n_actions"])
    assert hs.shape == (3 * bs, ts, cfg["n_agents"], cfg["rnn_hidden_dim"])
    assert x2_gate.shape == (3 * bs * ts, cfg["n_agents"], 2)
    assert W_rep.shape == (bs, ts, ne, ne) and I_rep.shape == (bs, ts, ne, ne)

    # imagine=False path (single replica)
    q0, hs0, g0 = imagine_forward(params, entities, obs_mask, entity_mask, hidden_state,
                                  cfg, kg, imagine=False)
    q0 = jax.block_until_ready(q0)
    assert q0.shape == (bs, ts, cfg["n_agents"], cfg["n_actions"])
    assert hs0.shape == (bs, ts, cfg["n_agents"], cfg["rnn_hidden_dim"])
    assert g0.shape == (bs * ts, cfg["n_agents"], 2)

    print("KERNEL_OK")
</pallas_src>

<mosaic_0001>
module attributes {stable_mosaic.version = 11 : i64} {
  func.func @_enc_qkv_kernel(%arg0: i32, %arg1: i32, %arg2: memref<30x11xf32, #tpu.memory_space<vmem>>, %arg3: memref<1x11x32xf32, #tpu.memory_space<vmem>>, %arg4: memref<1x1x32xf32, #tpu.memory_space<vmem>>, %arg5: memref<1x32x96xf32, #tpu.memory_space<vmem>>, %arg6: memref<1x30x96xf32, #tpu.memory_space<vmem>>) attributes {dimension_semantics = [#tpu.dimension_semantics<parallel>, #tpu.dimension_semantics<parallel>], iteration_bounds = array<i64: 3, 1>, scalar_prefetch = 0 : i64, scratch_operands = 0 : i64, tpu.core_type = #tpu.core_type<tc>, window_params = [{transform_indices = @transform_0, window_bounds = array<i64: 30, 11>}, {transform_indices = @transform_1, window_bounds = array<i64: 1, 11, 32>}, {transform_indices = @transform_2, window_bounds = array<i64: 1, 1, 32>}, {transform_indices = @transform_3, window_bounds = array<i64: 1, 32, 96>}, {transform_indices = @transform_4, window_bounds = array<i64: 1, 30, 96>}]} {
    %c0 = arith.constant 0 : index
    %c0_0 = arith.constant 0 : index
    %0 = vector.load %arg2[%c0, %c0_0] : memref<30x11xf32, #tpu.memory_space<vmem>>, vector<30x11xf32>
    %c0_1 = arith.constant 0 : index
    %c0_2 = arith.constant 0 : index
    %c0_3 = arith.constant 0 : index
    %1 = vector.load %arg3[%c0_1, %c0_2, %c0_3] : memref<1x11x32xf32, #tpu.memory_space<vmem>>, vector<1x11x32xf32>
    %2 = vector.shape_cast %1 : vector<1x11x32xf32> to vector<11x32xf32>
    %cst = arith.constant dense<0.000000e+00> : vector<30x32xf32>
    %3 = tpu.matmul %0, %2, %cst {dimension_numbers = #tpu.dot_dimension_numbers<[1], [0], [0], [1], [0, 0, 1, 1], [], []>} : vector<30x11xf32>, vector<11x32xf32>, vector<30x32xf32> -> vector<30x32xf32>
    %c0_4 = arith.constant 0 : index
    %c0_5 = arith.constant 0 : index
    %c0_6 = arith.constant 0 : index
    %4 = vector.load %arg4[%c0_4, %c0_5, %c0_6] : memref<1x1x32xf32, #tpu.memory_space<vmem>>, vector<1x1x32xf32>
    %5 = vector.shape_cast %4 : vector<1x1x32xf32> to vector<1x32xf32>
    %6 = vector.broadcast %5 : vector<1x32xf32> to vector<30x32xf32>
    %7 = arith.addf %3, %6 : vector<30x32xf32>
    %cst_7 = arith.constant 0.000000e+00 : f32
    %8 = vector.broadcast %cst_7 : f32 to vector<30x32xf32>
    %9 = arith.maximumf %7, %8 : vector<30x32xf32>
    %c0_8 = arith.constant 0 : index
    %c0_9 = arith.constant 0 : index
    %c0_10 = arith.constant 0 : index
    %10 = vector.load %arg5[%c0_8, %c0_9, %c0_10] : memref<1x32x96xf32, #tpu.memory_space<vmem>>, vector<1x32x96xf32>
    %11 = vector.shape_cast %10 : vector<1x32x96xf32> to vector<32x96xf32>
    %cst_11 = arith.constant dense<0.000000e+00> : vector<30x96xf32>
    %12 = tpu.matmul %9, %11, %cst_11 {dimension_numbers = #tpu.dot_dimension_numbers<[1], [0], [0], [1], [0, 0, 1, 1], [], []>} : vector<30x32xf32>, vector<32x96xf32>, vector<30x96xf32> -> vector<30x96xf32>
    %c0_12 = arith.constant 0 : index
    %c0_13 = arith.constant 0 : index
    %c0_14 = arith.constant 0 : index
    %13 = vector.load %arg6[%c0_12, %c0_13, %c0_14] : memref<1x30x96xf32, #tpu.memory_space<vmem>>, vector<1x30x96xf32>
    %14 = vector.shape_cast %13 : vector<1x30x96xf32> to vector<30x96xf32>
    %15 = vector.shape_cast %12 : vector<30x96xf32> to vector<1x30x96xf32>
    tpu.vector_store %arg6[%c0_12, %c0_13, %c0_14], %15 {strides = array<i32>} : memref<1x30x96xf32, #tpu.memory_space<vmem>>, vector<1x30x96xf32>,
    return
  }
  func.func @transform_0(%arg0: i32, %arg1: i32) -> (i32, i32) {
    %c0_i32 = arith.constant 0 : i32
    %c0_i32_0 = arith.constant 0 : i32
    return %arg1, %c0_i32 : i32, i32
  }
  func.func @transform_1(%arg0: i32, %arg1: i32) -> (i32, i32, i32) {
    %c0_i32 = arith.constant 0 : i32
    %c0_i32_0 = arith.constant 0 : i32
    %c0_i32_1 = arith.constant 0 : i32
    return %arg0, %c0_i32, %c0_i32_0 : i32, i32, i32
  }
  func.func @transform_2(%arg0: i32, %arg1: i32) -> (i32, i32, i32) {
    %c0_i32 = arith.constant 0 : i32
    %c0_i32_0 = arith.constant 0 : i32
    %c0_i32_1 = arith.constant 0 : i32
    return %arg0, %c0_i32, %c0_i32_0 : i32, i32, i32
  }
  func.func @transform_3(%arg0: i32, %arg1: i32) -> (i32, i32, i32) {
    %c0_i32 = arith.constant 0 : i32
    %c0_i32_0 = arith.constant 0 : i32
    %c0_i32_1 = arith.constant 0 : i32
    return %arg0, %c0_i32, %c0_i32_0 : i32, i32, i32
  }
  func.func @transform_4(%arg0: i32, %arg1: i32) -> (i32, i32, i32) {
    %c0_i32 = arith.constant 0 : i32
    %c0_i32_0 = arith.constant 0 : i32
    return %arg0, %arg1, %c0_i32 : i32, i32, i32
  }
}

</mosaic_0001>

<bundles_post_ra>
// kernel: tpu_custom_call.1
= control target key start
LH: loop header
LB: loop body
LE: loop exit
PB: predicated region body
PF: predicated region fallthrough
CT: control target
= control target key end

     0   :  { %9 = vsyncpa [#allocation3], 0  ;;  %s1009_s0 = inlined_call_operand.vmem [shape: f32[30,11], index: 0, kind: input, shape index: {}]   ;;  %s1010_s1 = inlined_call_operand.vmem [shape: f32[3,11,32], index: 1, kind: input, shape index: {}]   ;;  %s1011_s2 = inlined_call_operand.vmem [shape: f32[3,1,32], index: 2, kind: input, shape index: {}]   ;;  %s1012_s3 = inlined_call_operand.vmem [shape: f32[3,32,96], index: 3, kind: input, shape index: {}]   ;;  %s1013_s4 = inlined_call_operand.hbm [shape: f32[3,30,96], index: 4, kind: output, shape index: {}]  }
   0x1   :  { %11 = vsyncpa [#allocation3 + $0x1], 0  ;;  %s867_s15 = smov 0   ;;  %s869_s16 = smov 0  }
   0x2   :  { %s871_s17 = smov 0   ;;  %s873_s18 = smov 0  }
   0x3   :  { %s875_s19 = smov 0   ;;  %s877_s20 = smov 0  }
   0x4 LB: > { %s619_s21 = sadd.s32 4294967295, %s836_s20   ;;  %s620_s22 = sadd.s32 4294967294, %s836_s20   ;;  %s836_s20 = sphi %s877_s20, %s17_s20   ;;  %s832_s19 = sphi %s875_s19, %s1020_s19   ;;  %s828_s18 = sphi %s873_s18, %s1019_s18   ;;  %s824_s17 = sphi %s871_s17, %s1018_s17   ;;  %s820_s16 = sphi %s869_s16, %s1017_s16   ;;  %s816_s15 = sphi %s867_s15, %s1016_s15  }
   0x5   : > { %s29_s23 = sadd.s32 1, %s832_s19  ;;  %s142_s24 = sadd.s32 1, %s824_s17 }
   0x6   : > { %p31_p0 = scmp.ge.s32.totalorder %s29_s23, 3  ;;  %p152_p1 = scmp.ne.s32.totalorder %s824_s17, %s820_s16 }
   0x7   : > { %p153_p2 = scmp.eq.s32.totalorder %s619_s21, 2  ;;  %p158_p3 = scmp.ne.s32.totalorder %s820_s16, %s816_s15 }
   0x8   : > { %s1022_s23 = smov (%p31_p0, %s29_s23), 0  ;;  %p159_p5 = scmp.eq.s32.totalorder %s620_s22, 2 }
   0x9   : > { %p907_p4 = por %p153_p2, %p152_p1  ;;  %s137_s26 = ssub.s32 %s832_s19, %s1022_s23 }
   0xa   : > { %p624_p6 = scmp.ge.s32.totalorder %s836_s20, 1  ;;  %p140_p7 = scmp.eq.s32.totalorder %s137_s26, 0 }
   0xb   : > { %p914_p8 = por %p159_p5, %p158_p3  ;;  %p208_p9 = scmp.lt.s32.totalorder %s836_s20, 4 }
   0xc   : > { %s920_s28 = scalar_select %p140_p7, %s824_s17, %s142_s24  }
   0xd   : > { %p209_p10 = pnand %p624_p6, %p208_p9 }
   0xe   : > { %p253_p11 = scmp.lt.s32.totalorder (!%p209_p10), %s828_s18, 2  ;;  %v267_v0 = vld [vmem:[%s1009_s0] sm:$0xff] (!%p209_p10)  ;;  %vm280_vm0 = vcmask (!%p209_p10), 89088   ;;  %vm293_vm1 = vcmask (!%p209_p10), 1042432   ;;  %vm838_vm2 = vmmov (!%p209_p10), 1   ;;  %v268_v7 = vld [vmem:[%s1009_s0 + $0x8] sm:$0xff] (!%p209_p10) }
   0xf   : > { %212 = sbr.rel (%p209_p10) target bundleno = 483 (0x1e3), region = 36  ;;  %666 = vmatprep.mubr.msk.f32.mxu0 (!%p209_p10), %vm280_vm0, %v267_v0  ;;  %vm687_vm3 = vmpackc.low (!%p209_p10), %vm293_vm1, %vm838_vm2  ;;  %v269_v8 = vld [vmem:[%s1009_s0 + $0x10] sm:$0xff] (!%p209_p10)  ;;  %v270_v9 = vld [vmem:[%s1009_s0 + $0x18] sm:$0x3f] (!%p209_p10)  ;;  %vm390_vm4 = vcmask (!%p209_p10), 261120   ;;  %vm488_vm5 = vcmask (!%p209_p10), 785408  }
  0x10   : > { %s647_s11 = sshll.u32 (!%p209_p10), %s828_s18, 9  ;;  %vm492_vm6 = vcmask (!%p209_p10), 783360   ;;  %s839_s22 = smov (!%p209_p10), [#allocation2]  }
  0x11   : > { %s961_s14 = scalar_lea.hbm (!%p209_p10), %s1013_s4, %s647_s11  ;;  %s762_s24 = sshll.u32 (!%p209_p10), %s839_s22, 4  ;;  %s763_s24 = int_to_ptr.vmem [resolvable:$false] %s762_s24 }
  0x12   : > { %s764_s26 = scalar_lea.vmem (!%p209_p10), %s763_s24, 1024 }
  0x16   : > { %s928_s5 = scalar_select %p253_p11, %s828_s18, 2 }
  0x18   : > { %s645_s6 = sshll.u32 %s928_s5, 4  ;;  %s646_s7 = sshll.u32 %s928_s5, 5 }
  0x19   : > { %s257_s10 = scalar_lea.vmem %s1010_s1, %s645_s6  ;;  %s265_s13 = scalar_lea.vmem %s1012_s3, %s646_s7 }
  0x1a   : > { %v271_v1 = vld [vmem:[%s257_s10] sm:$0xff]  ;;  %v272_v2 = vld [vmem:[%s257_s10 + $0x8] sm:$0x7]  ;;  %v388_v10 = vld [vmem:[%s265_s13 + $0x10] sm:$0xff]  ;;  %s260_s7 = scalar_lea.vmem %s1011_s2, %s928_s5  ;;  %s244_s5 = sand.u32 1, %s820_s16  }
  0x1b   : > { %v386_v3 = vld [vmem:[%s265_s13] sm:$0xff]  ;;  %v686_v4 = vpack.c.bf16 %v272_v2, %v271_v1  ;;  %v387_v5 = vld [vmem:[%s265_s13 + $0x8] sm:$0xff]  ;;  %v389_v11 = vld [vmem:[%s265_s13 + $0x18] sm:$0xff]  ;;  %s625_s8 = sshll.u32 %s244_s5, 5  ;;  %s963_s21 = scalar_lea.sflag [#allocation3], %s244_s5 }
  0x1c   : > { %v692_v6 = vpack.c.bf16 %v387_v5, %v386_v3  ;;  %v696_v12 = vpack.c.bf16 %v389_v11, %v388_v10  ;;  %v630_v13 = vld [vmem:[%s260_s7] ss:$0 sm:$0xff]  ;;  %s246_s9 = scalar_lea.vmem [#allocation2], %s625_s8 }
  0x1d   : > { %688 = vmatprep.subr.msk.bf16.mxu0 %vm687_vm3, %v686_v4  ;;  %s510_s10 = sshll.u32 %s246_s9, 4  ;;  %s956_s10 = int_to_ptr.vmem [resolvable:$true] %s510_s10 }
  0x1e   : > { %691 = vmatpush3.bf16.msk.msra.mxu0 %vm687_vm3, %v686_v4  ;;  %693 = vmatprep.subr.bf16.mxu1 %v692_v6  ;;  %s758_s18 = scalar_lea.vmem %s956_s10, 512  ;;  %p765_p1 = scmp.lt.s32.totalorder %s956_s10, %s763_s24 }
  0x1f   : > { %695 = vmatpush3.bf16.msra.mxu1 %v692_v6  ;;  %p759_p12 = scmp.ne.s32.totalorder %s956_s10, %s758_s18  ;;  %p766_p2 = scmp.lt.s32.totalorder %s764_s26, %s758_s18 }
  0x20   : > { %697 = vmatprep.subr.bf16.mxu1 %v696_v12 }
  0x21   : > { %667 = vmatmul.mubr.msk.f32.vlgmr.msra.gmra.mrb[0].mxu0 %vm280_vm0, %v268_v7  ;;  %p760_p13 = pnand %p759_p12, %p907_p4  ;;  %p767_p3 = por %p766_p2, %p765_p1 }
  0x22   : > { %669 = vmatprep.mubr.msk.f32.mxu0 %vm280_vm0, %v269_v8 }
  0x23   : > { %699 = vmatpush3.bf16.msra.mxu1 %v696_v12  ;;  %p761_p0 = pneg %p760_p13 }
  0x25   : > { %670 = vmatmul.mubr.msk.f32.gmra.mrb[2].mxu0 %vm280_vm0, %v270_v9  ;;  %p768_p5 = pnand %p767_p3, %p761_p0 }
  0xf4   : > { %v668_v14 = vpop.f32.mrb[0].mxu0 }
  0xf5   : > { %v369_v15 = vadd.f32 %v668_v14, %v630_v13  ;;  %v363_v16 = vpop.f32.mrb[1].mxu0 }
  0xf6   : > { %v364_v17 = vadd.f32 %v630_v13, %v363_v16 }
  0xf7   : > { %v383_v20 = vmax.f32 %v369_v15, 0.0 }
  0xf8   : > { %v382_v18 = vmax.f32 %v364_v17, 0.0  ;;  %v671_v19 = vpop.f32.mrb[2].mxu0 }
  0xf9   : > { %v379_v21 = vadd.f32 %v671_v19, %v630_v13  ;;  %v373_v22 = vpop.f32.mrb[3].mxu0 }
  0xfa   : > { %v374_v23 = vadd.f32 %v630_v13, %v373_v22  ;;  %680 = vmatprep.mubr.msk.f32.mxu1 %vm390_vm4, %v382_v18 }
  0xfb   : > { %681 = vmatmul.mubr.msk.f32.vlgmr.msra.gmra.mrb[0].mxu1 %vm390_vm4, %v383_v20  ;;  %v385_v25 = vmax.f32 %v379_v21, 0.0 }
  0xfc   : > { %v384_v24 = vmax.f32 %v374_v23, 0.0 }
  0xfe   : > { %683 = vmatprep.mubr.msk.f32.mxu1 %vm390_vm4, %v384_v24 }
  0xff   : > { %684 = vmatmul.mubr.msk.f32.gmra.mrb[2].mxu1 %vm390_vm4, %v385_v25 }
 0x1ce   : > { %v682_v26 = vpop.f32.mrb[0].mxu1 }
 0x1cf   : > { %490 = vst.msk [vmem:[%s246_s9 + $0x8] sm:$0xff] %vm488_vm5, %v682_v26  ;;  %v469_v27 = vpop.f32.mrb[1].mxu1 }
 0x1d0   : > { %489 = vst.msk [vmem:[%s246_s9] sm:$0xff] %vm488_vm5, %v469_v27 }
 0x1d2   : > { %v685_v28 = vpop.f32.mrb[2].mxu1 }
 0x1d3   : > { %493 = vst.msk [vmem:[%s246_s9 + $0x18] sm:$0x3f] %vm492_vm6, %v685_v28  ;;  %v479_v29 = vpop.f32.mrb[3].mxu1 }
 0x1d4   : > { %491 = vst.msk [vmem:[%s246_s9 + $0x10] sm:$0xff] %vm488_vm5, %v479_v29 }
 0x1d5   : > { %771 = shalt.err (!%p768_p5)
}
 0x1d6   : > { %s772_s29 = scalar_lea.hbm %s961_s14, 512  ;;  %s776_s7 = scalar_lea.hbm %s1013_s4, 1536 }
 0x1d7   : > { %p773_p6 = scmp.ne.s32.totalorder %s961_s14, %s772_s29  ;;  %p777_p10 = scmp.lt.u32.totalorder %s961_s14, %s1013_s4 }
 0x1d8   : > { %p778_p11 = scmp.lt.u32.totalorder %s776_s7, %s772_s29  ;;  %p780_p13 = scmp.lt.u32.totalorder %s772_s29, %s961_s14 }
 0x1d9   : > { %p774_p7 = pnand %p773_p6, %p907_p4 }
 0x1da   : > { %p779_p12 = por %p778_p11, %p777_p10 }
 0x1db   : > { %p775_p9 = pneg %p774_p7 }
 0x1dc   : > { %p781_p0 = por %p780_p13, %p779_p12 }
 0x1de   : > { %p782_p1 = pnand %p781_p0, %p775_p9 }
 0x1e0   : > { %785 = shalt.err (!%p782_p1)
}
 0x1e1   : > { %s840_s9 = smov 128   ;;  %s841_s11 = smov 8  }
 0x1e2   : > { %700 = dma.vmem_to_hbm [thread:$0]  (%p907_p4), %s956_s10, 512, %s961_s14, %s963_s21, %s840_s9, %s840_s9, %s841_s11  }
 0x1e3 PF: > { %p706_p2 = scmp.ge.s32.totalorder %s836_s20, 2  ;;  %s525_s12 = sand.u32 1, %s816_s15  }
 0x1e4   : > { %s526_s13 = scalar_lea.sflag [#allocation3], %s525_s12 }
 0x1e5   : > { %p703_p3 = pnand %p706_p2, %p914_p8 }
 0x1e7   : > { %811 = dma.done.wait (!%p703_p3), %s526_s13, 512  }
 0x1e8   : > { %813 = vsyncadd (!%p703_p3), %s526_s13, 4294966784  ;;  %s17_s20 = sadd.s32 1, %s836_s20   ;;  %s1016_s15 = smov %s820_s16 }
 0x1e9   : > { %p14_p5 = scmp.ge.s32.totalorder %s17_s20, 5   ;;  %s1017_s16 = smov %s824_s17 }
 0x1ea   : > { %s1018_s17 = smov %s920_s28  ;;  %s1019_s18 = smov %s832_s19 }
 0x1eb   : > { %s1020_s19 = smov %s1022_s23  ;;  %16 = sbr.rel (!%p14_p5) target bundleno = 4 (0x4), region = 80 }
 0x1f2   :  { %531 = vsyncpa [#allocation3], 1 }
 0x1f3   :  { %533 = vsyncpa [#allocation3 + $0x1], 1 }

</bundles_post_ra>
